<compile_context>
chip_gen: v7x
topology: tpu7x:2x2x1
jax: 0.10.0
libtpu: 0.0.40
codegen_flags: <defaults>
</compile_context>

<pallas_src>
import jax
import jax.numpy as jnp
from jax.experimental import pallas as pl
from jax.experimental.pallas import tpu as pltpu

# ---- hyper-parameters from the PyTorch module ----
D_FEATURE = 8
DEPTH     = 3
N_NODE    = 2 ** DEPTH - 1      # 7
N_LEAF    = 2 ** DEPTH          # 8
N_LABEL   = 10
N_TREES   = 10

ALL_NODE = N_TREES * N_NODE     # 70
ALL_LEAF = N_TREES * N_LEAF     # 80


def _forest_kernel(xT_ref, w_ref, b_ref, piT_ref, o_ref):
    xT  = xT_ref[...]          # (D, TN)          TN = lane-tile of N = B*T
    w   = w_ref[...]           # (ALL_NODE, D)    level-major, bit-reversed node order
    b   = b_ref[...]           # (ALL_NODE, 1)
    piT = piT_ref[...]         # (N_LABEL, ALL_LEAF)  pre-scaled by 1/n_label

    # decisions for all trees / all nodes in one matmul (N on lanes)
    logits = jnp.dot(w, xT, preferred_element_type=jnp.float32) + b     # (70, TN)
    dec = jax.nn.sigmoid(logits)

    # Level-wise routing construction for all trees simultaneously.
    # Row layout of dec (per level): row = level_off + prefix_rev * N_TREES + tree,
    # arranged host-side so each level slice aligns with the running mu rows.
    d0 = dec[0:N_TREES]                                                  # (10, TN)
    mu = jnp.concatenate([d0, 1.0 - d0], axis=0)                         # (20, TN)
    d1 = dec[N_TREES:3 * N_TREES]                                        # (20, TN)
    mu = jnp.concatenate([mu * d1, mu * (1.0 - d1)], axis=0)             # (40, TN)
    d2 = dec[3 * N_TREES:7 * N_TREES]                                    # (40, TN)
    mu = jnp.concatenate([mu * d2, mu * (1.0 - d2)], axis=0)             # (80, TN)

    # sum over trees & leaves == single matmul against stacked, pre-scaled pi
    o_ref[...] = jnp.dot(piT, mu, preferred_element_type=jnp.float32)    # (10, TN)


def _bit_reverse(v, nbits):
    out = 0
    for j in range(nbits):
        out |= ((v >> j) & 1) << (nbits - 1 - j)
    return out


def _pack_params(weights, biases, pis):
    """Host-side repacking into the kernel's fused, permuted layout.

    weights: (N_TREES, D, N_NODE)   (already transposed for x @ W)
    biases : (N_TREES, N_NODE)
    pis    : (N_TREES, N_LEAF, N_LABEL)
    """
    # --- node permutation: level-major, prefix in bit-reversed order ---
    tree_idx, node_idx = [], []
    for d in range(DEPTH):
        for prefix_rev in range(2 ** d):
            # path bits b_0..b_{d-1}, with b_j = (prefix_rev >> j) & 1
            node = (2 ** d - 1)
            for j in range(d):
                node += ((prefix_rev >> j) & 1) * (2 ** (d - 1 - j))
            for t in range(N_TREES):
                tree_idx.append(t)
                node_idx.append(node)
    tree_idx = jnp.array(tree_idx, dtype=jnp.int32)
    node_idx = jnp.array(node_idx, dtype=jnp.int32)

    w_kT = weights[tree_idx, :, node_idx]                  # (ALL_NODE, D)
    b_k = biases[tree_idx, node_idx][:, None]              # (ALL_NODE, 1)

    # --- leaf permutation: kernel leaf index is the bit-reversed std leaf ---
    leaf_tree, leaf_std = [], []
    for leaf_rev in range(N_LEAF):
        std_leaf = _bit_reverse(leaf_rev, DEPTH)
        for t in range(N_TREES):
            leaf_tree.append(t)
            leaf_std.append(std_leaf)
    pi_k = pis[jnp.array(leaf_tree, dtype=jnp.int32),
               jnp.array(leaf_std, dtype=jnp.int32), :]    # (ALL_LEAF, N_LABEL)
    piT = (pi_k * (1.0 / N_LABEL)).T                       # (N_LABEL, ALL_LEAF)

    return (w_kT.astype(jnp.float32),
            b_k.astype(jnp.float32),
            piT.astype(jnp.float32))


def conditional_forest_forward(x, weights, biases, pis, *, n_tile=512):
    """x: (B, T, D) float32. Returns (B, T, n_label) float32."""
    B, T, D = x.shape
    N = B * T
    w_kT, b_k, piT = _pack_params(weights, biases, pis)

    # lane-major layout: x^T (D, N), padded so the lane dim tiles by n_tile
    n_pad = ((N + n_tile - 1) // n_tile) * n_tile
    xT = x.reshape(N, D).astype(jnp.float32).T             # (D, N)
    xT = jnp.pad(xT, ((0, 0), (0, n_pad - N)))             # (D, n_pad)

    out = pl.pallas_call(
        _forest_kernel,
        out_shape=jax.ShapeDtypeStruct((N_LABEL, n_pad), jnp.float32),
        grid_spec=pltpu.PrefetchScalarGridSpec(
            num_scalar_prefetch=0,
            grid=(n_pad // n_tile,),
            in_specs=[
                pl.BlockSpec((D, n_tile), lambda i: (0, i)),          # x^T tile
                pl.BlockSpec((ALL_NODE, D), lambda i: (0, 0)),        # fused W
                pl.BlockSpec((ALL_NODE, 1), lambda i: (0, 0)),        # fused b
                pl.BlockSpec((N_LABEL, ALL_LEAF), lambda i: (0, 0)),  # fused pi^T
            ],
            out_specs=pl.BlockSpec((N_LABEL, n_tile), lambda i: (0, i)),
        ),
        compiler_params=pltpu.CompilerParams(
            dimension_semantics=("parallel",)),
    )(xT, w_kT, b_k, piT)

    return out[:, :N].T.reshape(B, T, N_LABEL)


def _reference(x, weights, biases, pis):
    """Pure-JAX reference mirroring the PyTorch code."""
    B, T, D = x.shape
    dec = jax.nn.sigmoid(jnp.einsum("btd,ndk->nbtk", x, weights)
                         + biases[:, None, None, :])
    preds = jnp.zeros((B, T, N_LABEL), jnp.float32)
    for t in range(N_TREES):
        cols = []
        for leaf in range(N_LEAF):
            p = jnp.ones((B, T), jnp.float32)
            node = 0
            for d in range(DEPTH):
                bit = (leaf >> (DEPTH - 1 - d)) & 1
                dp = dec[t, :, :, node]
                p = p * (dp if bit == 0 else (1.0 - dp))
                node = 2 * node + 1 + bit
            cols.append(p)
        routing = jnp.stack(cols, axis=-1)                 # (B, T, n_leaf)
        preds = preds + routing @ pis[t] * (1.0 / N_LABEL)
    return preds


if __name__ == "__main__":
    key = jax.random.PRNGKey(0)
    kx, kw, kb, kp = jax.random.split(key, 4)

    B, T = 2, 8
    x = jax.random.normal(kx, (B, T, D_FEATURE), dtype=jnp.float32)

    # Deterministic synthetic parameters (shapes from tree.__init__).
    # nn.Linear(input_d, n_node): weight (n_node, input_d), bias (n_node,);
    # we store the transposed weight (input_d, n_node) per tree for x @ W.
    bound = 1.0 / (D_FEATURE ** 0.5)
    weights = jax.random.uniform(kw, (N_TREES, D_FEATURE, N_NODE),
                                 minval=-bound, maxval=bound, dtype=jnp.float32)
    biases = jax.random.uniform(kb, (N_TREES, N_NODE),
                                minval=-bound, maxval=bound, dtype=jnp.float32)
    # pi = softmax(rand(n_leaf, n_label), dim=1) per tree
    pis = jax.nn.softmax(
        jax.random.uniform(kp, (N_TREES, N_LEAF, N_LABEL), dtype=jnp.float32),
        axis=-1)

    out = conditional_forest_forward(x, weights, biases, pis)
    out = jax.block_until_ready(out)

    ref = _reference(x, weights, biases, pis)
    assert out.shape == (B, T, N_LABEL)
    assert jnp.allclose(out, ref, atol=1e-5, rtol=1e-5), "mismatch vs reference"

    # TODO(synk): conditional=True (recurrent dependence) and update_pi=True
    # (EM pi update) branches not implemented; default forward path uses
    # conditional=False, update_pi=False.
    print("KERNEL_OK")
</pallas_src>

<mosaic_0001>
module attributes {stable_mosaic.version = 11 : i64} {
  func.func @_forest_kernel(%arg0: i32, %arg1: memref<8x512xf32, #tpu.memory_space<vmem>>, %arg2: memref<70x8xf32, #tpu.memory_space<vmem>>, %arg3: memref<70x1xf32, #tpu.memory_space<vmem>>, %arg4: memref<10x80xf32, #tpu.memory_space<vmem>>, %arg5: memref<10x512xf32, #tpu.memory_space<vmem>>) attributes {dimension_semantics = [#tpu.dimension_semantics<parallel>], iteration_bounds = array<i64: 1>, scalar_prefetch = 0 : i64, scratch_operands = 0 : i64, tpu.core_type = #tpu.core_type<tc>, window_params = [{transform_indices = @transform_0, window_bounds = array<i64: 8, 512>}, {pipeline_mode = #tpu.pipeline_mode<synchronous>, transform_indices = @transform_1, window_bounds = array<i64: 70, 8>}, {pipeline_mode = #tpu.pipeline_mode<synchronous>, transform_indices = @transform_2, window_bounds = array<i64: 70, 1>}, {pipeline_mode = #tpu.pipeline_mode<synchronous>, transform_indices = @transform_3, window_bounds = array<i64: 10, 80>}, {transform_indices = @transform_4, window_bounds = array<i64: 10, 512>}]} {
    %c0 = arith.constant 0 : index
    %c0_0 = arith.constant 0 : index
    %0 = vector.load %arg1[%c0, %c0_0] : memref<8x512xf32, #tpu.memory_space<vmem>>, vector<8x512xf32>
    %c0_1 = arith.constant 0 : index
    %c0_2 = arith.constant 0 : index
    %1 = vector.load %arg2[%c0_1, %c0_2] : memref<70x8xf32, #tpu.memory_space<vmem>>, vector<70x8xf32>
    %c0_3 = arith.constant 0 : index
    %c0_4 = arith.constant 0 : index
    %2 = vector.load %arg3[%c0_3, %c0_4] : memref<70x1xf32, #tpu.memory_space<vmem>>, vector<70x1xf32>
    %c0_5 = arith.constant 0 : index
    %c0_6 = arith.constant 0 : index
    %3 = vector.load %arg4[%c0_5, %c0_6] : memref<10x80xf32, #tpu.memory_space<vmem>>, vector<10x80xf32>
    %cst = arith.constant dense<0.000000e+00> : vector<70x512xf32>
    %4 = tpu.matmul %1, %0, %cst {dimension_numbers = #tpu.dot_dimension_numbers<[1], [0], [0], [1], [0, 0, 1, 1], [], []>} : vector<70x8xf32>, vector<8x512xf32>, vector<70x512xf32> -> vector<70x512xf32>
    %5 = vector.broadcast %2 : vector<70x1xf32> to vector<70x512xf32>
    %6 = arith.addf %4, %5 : vector<70x512xf32>
    %7 = arith.negf %6 : vector<70x512xf32>
    %8 = math.exp %7 : vector<70x512xf32>
    %cst_7 = arith.constant 1.000000e+00 : f32
    %9 = vector.broadcast %cst_7 : f32 to vector<70x512xf32>
    %10 = arith.addf %9, %8 : vector<70x512xf32>
    %11 = arith.divf %9, %10 : vector<70x512xf32>
    %12 = vector.extract_strided_slice %11 {offsets = [0, 0], sizes = [10, 512], strides = [1, 1]} : vector<70x512xf32> to vector<10x512xf32>
    %cst_8 = arith.constant 1.000000e+00 : f32
    %13 = vector.broadcast %cst_8 : f32 to vector<10x512xf32>
    %14 = arith.subf %13, %12 : vector<10x512xf32>
    %15 = tpu.concatenate %12, %14 in 0 : vector<10x512xf32>, vector<10x512xf32> -> vector<20x512xf32>
    %16 = vector.extract_strided_slice %11 {offsets = [10, 0], sizes = [20, 512], strides = [1, 1]} : vector<70x512xf32> to vector<20x512xf32>
    %17 = arith.mulf %15, %16 : vector<20x512xf32>
    %cst_9 = arith.constant 1.000000e+00 : f32
    %18 = vector.broadcast %cst_9 : f32 to vector<20x512xf32>
    %19 = arith.subf %18, %16 : vector<20x512xf32>
    %20 = arith.mulf %15, %19 : vector<20x512xf32>
    %21 = tpu.concatenate %17, %20 in 0 : vector<20x512xf32>, vector<20x512xf32> -> vector<40x512xf32>
    %22 = vector.extract_strided_slice %11 {offsets = [30, 0], sizes = [40, 512], strides = [1, 1]} : vector<70x512xf32> to vector<40x512xf32>
    %23 = arith.mulf %21, %22 : vector<40x512xf32>
    %cst_10 = arith.constant 1.000000e+00 : f32
    %24 = vector.broadcast %cst_10 : f32 to vector<40x512xf32>
    %25 = arith.subf %24, %22 : vector<40x512xf32>
    %26 = arith.mulf %21, %25 : vector<40x512xf32>
    %27 = tpu.concatenate %23, %26 in 0 : vector<40x512xf32>, vector<40x512xf32> -> vector<80x512xf32>
    %cst_11 = arith.constant dense<0.000000e+00> : vector<10x512xf32>
    %28 = tpu.matmul %3, %27, %cst_11 {dimension_numbers = #tpu.dot_dimension_numbers<[1], [0], [0], [1], [0, 0, 1, 1], [], []>} : vector<10x80xf32>, vector<80x512xf32>, vector<10x512xf32> -> vector<10x512xf32>
    %c0_12 = arith.constant 0 : index
    %c0_13 = arith.constant 0 : index
    %29 = vector.load %arg5[%c0_12, %c0_13] : memref<10x512xf32, #tpu.memory_space<vmem>>, vector<10x512xf32>
    tpu.vector_store %arg5[%c0_12, %c0_13], %28 {strides = array<i32>} : memref<10x512xf32, #tpu.memory_space<vmem>>, vector<10x512xf32>,
    return
  }
  func.func @transform_0(%arg0: i32) -> (i32, i32) {
    %c0_i32 = arith.constant 0 : i32
    %c0_i32_0 = arith.constant 0 : i32
    return %c0_i32, %arg0 : i32, i32
  }
  func.func @transform_1(%arg0: i32) -> (i32, i32) {
    %c0_i32 = arith.constant 0 : i32
    %c0_i32_0 = arith.constant 0 : i32
    %c0_i32_1 = arith.constant 0 : i32
    return %c0_i32, %c0_i32_0 : i32, i32
  }
  func.func @transform_2(%arg0: i32) -> (i32, i32) {
    %c0_i32 = arith.constant 0 : i32
    %c0_i32_0 = arith.constant 0 : i32
    %c0_i32_1 = arith.constant 0 : i32
    return %c0_i32, %c0_i32_0 : i32, i32
  }
  func.func @transform_3(%arg0: i32) -> (i32, i32) {
    %c0_i32 = arith.constant 0 : i32
    %c0_i32_0 = arith.constant 0 : i32
    %c0_i32_1 = arith.constant 0 : i32
    return %c0_i32, %c0_i32_0 : i32, i32
  }
  func.func @transform_4(%arg0: i32) -> (i32, i32) {
    %c0_i32 = arith.constant 0 : i32
    %c0_i32_0 = arith.constant 0 : i32
    return %c0_i32, %arg0 : i32, i32
  }
}

</mosaic_0001>

<bundles_post_ra>
// kernel: tpu_custom_call.1
= control target key start
LH: loop header
LB: loop body
LE: loop exit
PB: predicated region body
PF: predicated region fallthrough
CT: control target
= control target key end

     0   :  { %vm87_vm0 = vcmask 64512   ;;  %v2173_v5 = vmov 0.0   ;;  %v1463_v9 = vmov 0   ;;  %s2168_s0 = inlined_call_operand.vmem [shape: f32[8,512], index: 0, kind: input, shape index: {}]   ;;  %s2169_s1 = inlined_call_operand.vmem [shape: f32[70,8], index: 1, kind: input, shape index: {}]   ;;  %s2170_s2 = inlined_call_operand.vmem [shape: f32[70,1], index: 2, kind: input, shape index: {}]   ;;  %s2171_s3 = inlined_call_operand.vmem [shape: f32[10,80], index: 3, kind: input, shape index: {}]   ;;  %s2172_s4 = inlined_call_operand.hbm [shape: f32[10,512], index: 4, kind: output, shape index: {}]  }
   0x1   :  { %v19_v0 = vld [vmem:[%s2168_s0 + $0x8] sm:$0xff]  ;;  %v21_v1 = vld [vmem:[%s2168_s0 + $0x18] sm:$0xff]  ;;  %v18_v2 = vld [vmem:[%s2168_s0] sm:$0xff]  ;;  %179 = vmatprep.mubr.f32.mxu0 %v2173_v5  ;;  %298 = vmatprep.mubr.f32.mxu1 %v2173_v5 }
   0x2   :  { %115 = vmatprep.subr.mxu0 %v19_v0  ;;  %234 = vmatprep.subr.mxu1 %v21_v1  ;;  %v20_v3 = vld [vmem:[%s2168_s0 + $0x10] sm:$0xff]  ;;  %v22_v4 = vld [vmem:[%s2169_s1] sm:$0xff]  ;;  %v23_v8 = vld [vmem:[%s2169_s1 + $0x8] sm:$0xff] }
   0x3   :  { %116 = vmatpush1.msra.mxu0 %v18_v2  ;;  %235 = vmatpush1.msra.mxu1 %v20_v3  ;;  %v31_v6 = vld [vmem:[%s2170_s2] sm:$0xff]  ;;  %v33_v7 = vld [vmem:[%s2170_s2 + $0x10] sm:$0xff] }
   0x4   :  { %1189 = vmatmul.mubr.msk.f32.vlgmr.msra.gmra.mrb[0].mxu0 %vm87_vm0, %v22_v4  ;;  %1198 = vmatmul.mubr.msk.f32.vlgmr.msra.gmra.mrb[0].mxu1 %vm87_vm0, %v22_v4 }
   0x5   :  { %185 = vmatprep.mubr.f32.mxu0 %v2173_v5  ;;  %304 = vmatprep.mubr.f32.mxu1 %v2173_v5 }
   0x6   :  { %1292 = vset.pattern.permute.xlu0 %v1463_v9  ;;  %1293 = vset.pattern.permute.xlu1 %v1463_v9 }
   0x7   :  { %44 = vperm.xlu0 %1292, %v31_v6   ;;  %54 = vperm.xlu1 %1293, %v33_v7  }
   0x8   :  { %9 = vsyncpa [#allocation3], 0  ;;  %1190 = vmatmul.mubr.msk.f32.gmra.mrb[2].mxu0 %vm87_vm0, %v23_v8  ;;  %1199 = vmatmul.mubr.msk.f32.gmra.mrb[2].mxu1 %vm87_vm0, %v23_v8  ;;  %v32_v10 = vld [vmem:[%s2170_s2 + $0x8] sm:$0xff]  ;;  %v34_v11 = vld [vmem:[%s2170_s2 + $0x18] sm:$0xff]  ;;  %vm585_vm1 = vcmask 1041408   ;;  %vm622_vm2 = vcmask 1045504  }
   0x9   :  { %191 = vmatprep.mubr.f32.mxu0 %v2173_v5  ;;  %310 = vmatprep.mubr.f32.mxu1 %v2173_v5  ;;  %v24_v12 = vld [vmem:[%s2169_s1 + $0x10] sm:$0xff]  ;;  %v35_v13 = vld [vmem:[%s2170_s2 + $0x20] sm:$0xff]  ;;  %v36_v14 = vld [vmem:[%s2170_s2 + $0x28] sm:$0xff]  ;;  %vm739_vm3 = vcmask 1043456   ;;  %vm1004_vm4 = vcmask 654336   ;;  %s1464_s7 = smov [#allocation2]  }
   0xa   :  { %v25_v15 = vld [vmem:[%s2169_s1 + $0x18] sm:$0xff]  ;;  %v37_v16 = vld [vmem:[%s2170_s2 + $0x30] sm:$0xff]  ;;  %v26_v18 = vld [vmem:[%s2169_s1 + $0x20] sm:$0xff]  ;;  %s1178_s8 = sshll.u32 %s1464_s7, 4  ;;  %s1179_s8 = int_to_ptr.vmem [resolvable:$true] %s1178_s8 }
   0xb   :  { %49 = vperm.xlu0 %1292, %v32_v10   ;;  %59 = vperm.xlu1 %1293, %v34_v11   ;;  %v38_v17 = vld [vmem:[%s2170_s2 + $0x38] sm:$0xff]  ;;  %v39_v19 = vld [vmem:[%s2170_s2 + $0x40] sm:$0x3f]  ;;  %v27_v20 = vld [vmem:[%s2169_s1 + $0x28] sm:$0xff]  ;;  %p1443_p1 = scmp.lt.s32.totalorder %s1179_s8, %s1179_s8 }
   0xc   :  { %1191 = vmatmul.mubr.msk.f32.gmra.mrb[4].mxu0 %vm87_vm0, %v24_v12  ;;  %1200 = vmatmul.mubr.msk.f32.gmra.mrb[4].mxu1 %vm87_vm0, %v24_v12  ;;  %v28_v21 = vld [vmem:[%s2169_s1 + $0x30] sm:$0xff]  ;;  %v29_v22 = vld [vmem:[%s2169_s1 + $0x38] sm:$0xff]  ;;  %v30_v23 = vld [vmem:[%s2169_s1 + $0x40] sm:$0x3f] }
   0xd   :  { %197 = vmatprep.mubr.f32.mxu0 %v2173_v5  ;;  %316 = vmatprep.mubr.f32.mxu1 %v2173_v5 }
   0xf   :  { %64 = vperm.xlu0 %1292, %v35_v13   ;;  %69 = vperm.xlu1 %1293, %v36_v14  }
  0x10   :  { %1192 = vmatmul.mubr.msk.f32.gmra.mrb[6].mxu0 %vm87_vm0, %v25_v15  ;;  %1201 = vmatmul.mubr.msk.f32.gmra.mrb[6].mxu1 %vm87_vm0, %v25_v15 }
  0x11   :  { %203 = vmatprep.mubr.f32.mxu0 %v2173_v5  ;;  %322 = vmatprep.mubr.f32.mxu1 %v2173_v5 }
  0x13   :  { %74 = vperm.xlu0 %1292, %v37_v16   ;;  %79 = vperm.xlu1 %1293, %v38_v17  }
  0x14   :  { %1193 = vmatmul.mubr.msk.f32.gmra.mrb[8].mxu0 %vm87_vm0, %v26_v18  ;;  %1202 = vmatmul.mubr.msk.f32.gmra.mrb[8].mxu1 %vm87_vm0, %v26_v18 }
  0x15   :  { %209 = vmatprep.mubr.f32.mxu0 %v2173_v5  ;;  %328 = vmatprep.mubr.f32.mxu1 %v2173_v5 }
  0x17   :  { %84 = vperm.xlu0 %1292, %v39_v19  }
  0x18   :  { %1194 = vmatmul.mubr.msk.f32.gmra.mrb[10].mxu0 %vm87_vm0, %v27_v20  ;;  %1203 = vmatmul.mubr.msk.f32.gmra.mrb[10].mxu1 %vm87_vm0, %v27_v20 }
  0x19   :  { %215 = vmatprep.mubr.f32.mxu0 %v2173_v5  ;;  %334 = vmatprep.mubr.f32.mxu1 %v2173_v5 }
  0x1c   :  { %1195 = vmatmul.mubr.msk.f32.gmra.mrb[12].mxu0 %vm87_vm0, %v28_v21  ;;  %1204 = vmatmul.mubr.msk.f32.gmra.mrb[12].mxu1 %vm87_vm0, %v28_v21 }
  0x1d   :  { %221 = vmatprep.mubr.f32.mxu0 %v2173_v5  ;;  %340 = vmatprep.mubr.f32.mxu1 %v2173_v5 }
  0x20   :  { %1196 = vmatmul.mubr.msk.f32.gmra.mrb[14].mxu0 %vm87_vm0, %v29_v22  ;;  %1205 = vmatmul.mubr.msk.f32.gmra.mrb[14].mxu1 %vm87_vm0, %v29_v22 }
  0x21   :  { %227 = vmatprep.mubr.f32.mxu0 %v2173_v5  ;;  %346 = vmatprep.mubr.f32.mxu1 %v2173_v5 }
  0x24   :  { %1197 = vmatmul.mubr.msk.f32.gmra.mrb[16].mxu0 %vm87_vm0, %v30_v23  ;;  %1206 = vmatmul.mubr.msk.f32.gmra.mrb[16].mxu1 %vm87_vm0, %v30_v23 }
  0x25   :  { %1075 = vmatprep.mubr.f32.mxu0 %v2173_v5  ;;  %1152 = vmatprep.mubr.f32.mxu1 %v2173_v5 }
  0x86   :  { %v45_v24 = vpop.permute.xlu0 %44  ;;  %v55_v36 = vpop.permute.xlu1 %54 }
  0x8a   :  { %v50_v31 = vpop.permute.xlu0 %49  ;;  %v60_v59 = vpop.permute.xlu1 %59 }
  0x8e   :  { %v65_v13 = vpop.permute.xlu0 %64 }
  0xd7   :  { %v181_v25 = vpop.f32.mrb[0].mxu0  ;;  %v300_v26 = vpop.f32.mrb[0].mxu1 }
  0xd8   :  { %v182_v27 = vadd.f32 %v181_v25, %v45_v24  ;;  %v301_v28 = vadd.f32 %v300_v26, %v45_v24  ;;  %v183_v29 = vpop.f32.mrb[1].mxu0  ;;  %v302_v30 = vpop.f32.mrb[1].mxu1 }
  0xd9   :  { %v184_v32 = vadd.f32 %v183_v29, %v45_v24  ;;  %v303_v33 = vadd.f32 %v302_v30, %v45_v24 }
  0xda   :  { %v1207_v34 = vmul.f32 -1.442695, %v182_v27  ;;  %v1209_v35 = vmul.f32 -1.442695, %v301_v28 }
  0xdb   :  { %v1208_v37 = vmul.f32 -1.442695, %v184_v32  ;;  %v1210_v38 = vmul.f32 -1.442695, %v303_v33  ;;  %v187_v39 = vpop.f32.mrb[2].mxu0  ;;  %v306_v40 = vpop.f32.mrb[2].mxu1 }
  0xdc   :  { %1294 = vpow2.f32 %v1207_v34  ;;  %v188_v41 = vadd.f32 %v187_v39, %v50_v31  ;;  %v307_v42 = vadd.f32 %v306_v40, %v50_v31  ;;  %v189_v43 = vpop.f32.mrb[3].mxu0  ;;  %v308_v44 = vpop.f32.mrb[3].mxu1 }
  0xdd   :  { %1296 = vpow2.f32 %v1209_v35  ;;  %v190_v45 = vadd.f32 %v189_v43, %v50_v31  ;;  %v309_v46 = vadd.f32 %v308_v44, %v50_v31  ;;  %v70_v34 = vpop.permute.xlu1 %69 }
  0xde   :  { %1298 = vpow2.f32 %v1208_v37  ;;  %v1211_v47 = vmul.f32 -1.442695, %v188_v41  ;;  %v1213_v48 = vmul.f32 -1.442695, %v307_v42 }
  0xdf   :  { %1300 = vpow2.f32 %v1210_v38  ;;  %v1212_v49 = vmul.f32 -1.442695, %v190_v45  ;;  %v1214_v50 = vmul.f32 -1.442695, %v309_v46  ;;  %v193_v51 = vpop.f32.mrb[4].mxu0  ;;  %v312_v52 = vpop.f32.mrb[4].mxu1 }
  0xe0   :  { %1302 = vpow2.f32 %v1211_v47  ;;  %v194_v53 = vadd.f32 %v193_v51, %v55_v36  ;;  %v313_v54 = vadd.f32 %v312_v52, %v55_v36  ;;  %v195_v55 = vpop.f32.mrb[5].mxu0  ;;  %v314_v56 = vpop.f32.mrb[5].mxu1 }
  0xe1   :  { %1304 = vpow2.f32 %v1213_v48  ;;  %v196_v57 = vadd.f32 %v195_v55, %v55_v36  ;;  %v315_v58 = vadd.f32 %v314_v56, %v55_v36  ;;  %v75_v55 = vpop.permute.xlu0 %74 }
  0xe2   :  { %1306 = vpow2.f32 %v1212_v49  ;;  %v1215_v60 = vmul.f32 -1.442695, %v194_v53  ;;  %v1217_v61 = vmul.f32 -1.442695, %v313_v54 }
  0xe3   :  { %1308 = vpow2.f32 %v1214_v50  ;;  %v1216_v62 = vmul.f32 -1.442695, %v196_v57  ;;  %v1218_v63 = vmul.f32 -1.442695, %v315_v58  ;;  %v199_v0 = vpop.f32.mrb[6].mxu0  ;;  %v318_v1 = vpop.f32.mrb[6].mxu1 }
  0xe4   :  { %1310 = vpow2.f32 %v1215_v60  ;;  %v200_v2 = vadd.f32 %v199_v0, %v60_v59  ;;  %v319_v3 = vadd.f32 %v318_v1, %v60_v59  ;;  %v201_v4 = vpop.f32.mrb[7].mxu0  ;;  %v320_v6 = vpop.f32.mrb[7].mxu1 }
  0xe5   :  { %1312 = vpow2.f32 %v1217_v61  ;;  %v202_v7 = vadd.f32 %v201_v4, %v60_v59  ;;  %v321_v8 = vadd.f32 %v320_v6, %v60_v59 }
  0xe6   :  { %v1295_v9 = vpop.eup %1294  ;;  %1314 = vpow2.f32 %v1216_v62  ;;  %v1219_v10 = vmul.f32 -1.442695, %v200_v2  ;;  %v1596_v14 = vmul.f32 -1.442695, %v319_v3 }
  0xe7   :  { %v1297_v11 = vpop.eup %1296  ;;  %v461_v12 = vadd.f32 1.0, %v1295_v9  ;;  %1316 = vpow2.f32 %v1218_v63  ;;  %v1598_v15 = vmul.f32 -1.442695, %v202_v7  ;;  %v205_v16 = vpop.f32.mrb[8].mxu0  ;;  %v1600_v19 = vmul.f32 -1.442695, %v321_v8 }
  0xe8   :  { %v1299_v17 = vpop.eup %1298  ;;  %v463_v18 = vadd.f32 1.0, %v1297_v11  ;;  %1318 = vpow2.f32 %v1219_v10  ;;  %v206_v20 = vadd.f32 %v205_v16, %v65_v13  ;;  %v324_v21 = vpop.f32.mrb[8].mxu1 }
  0xe9   :  { %v207_v22 = vpop.f32.mrb[9].mxu0  ;;  %v1301_v23 = vpop.eup %1300  ;;  %1320 = vrcp.f32 %v461_v12  ;;  %v462_v24 = vadd.f32 1.0, %v1299_v17  ;;  %v325_v25 = vadd.f32 %v324_v21, %v65_v13 }
  0xea   :  { %v208_v26 = vadd.f32 %v207_v22, %v65_v13  ;;  %v326_v27 = vpop.f32.mrb[9].mxu1  ;;  %v1303_v28 = vpop.eup %1302  ;;  %1322 = vrcp.f32 %v463_v18  ;;  %v464_v29 = vadd.f32 1.0, %v1301_v23  ;;  %v1602_v30 = vmul.f32 -1.442695, %v206_v20 }
  0xeb   :  { %v327_v31 = vadd.f32 %v326_v27, %v65_v13  ;;  %v1305_v32 = vpop.eup %1304  ;;  %1324 = vrcp.f32 %v462_v24  ;;  %v465_v33 = vadd.f32 1.0, %v1303_v28  ;;  %v1604_v35 = vmul.f32 -1.442695, %v325_v25  ;;  %v211_v37 = vpop.f32.mrb[10].mxu0 }
  0xec   :  { %v1606_v36 = vmul.f32 -1.442695, %v208_v26  ;;  %v1307_v38 = vpop.eup %1306  ;;  %1326 = vrcp.f32 %v464_v29  ;;  %v467_v39 = vadd.f32 1.0, %v1305_v32  ;;  %v212_v41 = vadd.f32 %v211_v37, %v70_v34  ;;  %v330_v42 = vpop.f32.mrb[10].mxu1 }
  0xed   :  { %v1608_v40 = vmul.f32 -1.442695, %v327_v31  ;;  %v213_v43 = vpop.f32.mrb[11].mxu0  ;;  %v1309_v44 = vpop.eup %1308  ;;  %1328 = vrcp.f32 %v465_v33  ;;  %v466_v45 = vadd.f32 1.0, %v1307_v38  ;;  %v331_v46 = vadd.f32 %v330_v42, %v70_v34 }
  0xee   :  { %v214_v47 = vadd.f32 %v213_v43, %v70_v34  ;;  %v332_v48 = vpop.f32.mrb[11].mxu1  ;;  %v1311_v49 = vpop.eup %1310  ;;  %1330 = vrcp.f32 %v467_v39  ;;  %v468_v50 = vadd.f32 1.0, %v1309_v44  ;;  %v1610_v51 = vmul.f32 -1.442695, %v212_v41 }
  0xef   :  { %v333_v52 = vadd.f32 %v332_v48, %v70_v34  ;;  %v1313_v53 = vpop.eup %1312  ;;  %1332 = vrcp.f32 %v466_v45  ;;  %v469_v54 = vadd.f32 1.0, %v1311_v49  ;;  %v1612_v56 = vmul.f32 -1.442695, %v331_v46  ;;  %v217_v58 = vpop.f32.mrb[12].mxu0 }
  0xf0   :  { %v1614_v57 = vmul.f32 -1.442695, %v214_v47  ;;  %v1315_v59 = vpop.eup %1314  ;;  %1334 = vrcp.f32 %v468_v50  ;;  %v471_v60 = vadd.f32 1.0, %v1313_v53  ;;  %v218_v62 = vadd.f32 %v217_v58, %v75_v55  ;;  %v336_v63 = vpop.f32.mrb[12].mxu1 }
  0xf1   :  { %v1616_v61 = vmul.f32 -1.442695, %v333_v52  ;;  %v219_v0 = vpop.f32.mrb[13].mxu0  ;;  %v1317_v1 = vpop.eup %1316  ;;  %1336 = vrcp.f32 %v469_v54  ;;  %v470_v2 = vadd.f32 1.0, %v1315_v59  ;;  %v337_v3 = vadd.f32 %v336_v63, %v75_v55 }
  0xf2   :  { %v220_v4 = vadd.f32 %v219_v0, %v75_v55  ;;  %v338_v6 = vpop.f32.mrb[13].mxu1  ;;  %v1319_v7 = vpop.eup %1318  ;;  %1338 = vrcp.f32 %v471_v60  ;;  %v472_v8 = vadd.f32 1.0, %v1317_v1  ;;  %v1618_v9 = vmul.f32 -1.442695, %v218_v62 }
  0xf3   :  { %v339_v10 = vadd.f32 %v338_v6, %v75_v55  ;;  %v1620_v11 = vpop.eup %1320  ;;  %1340 = vrcp.f32 %v470_v2  ;;  %v473_v12 = vadd.f32 1.0, %v1319_v7  ;;  %v80_v13 = vpop.permute.xlu1 %79  ;;  %v1622_v16 = vmul.f32 -1.442695, %v337_v3 }
  0xf4   :  { %v1624_v17 = vmul.f32 -1.442695, %v220_v4  ;;  %v223_v18 = vpop.f32.mrb[14].mxu0  ;;  %v1626_v20 = vpop.eup %1322  ;;  %1342 = vrcp.f32 %v472_v8  ;;  %v569_v25 = vsub.f32 1.0, %v1620_v11 }
  0xf5   :  { %v1628_v21 = vmul.f32 -1.442695, %v339_v10  ;;  %v224_v22 = vadd.f32 %v223_v18, %v80_v13  ;;  %v342_v23 = vpop.f32.mrb[14].mxu1  ;;  %v225_v24 = vpop.f32.mrb[15].mxu0  ;;  %1344 = vrcp.f32 %v473_v12  ;;  %v571_v31 = vsub.f32 1.0, %v1626_v20 }
  0xf6   :  { %v1631_v26 = vpop.eup %1324  ;;  %v343_v27 = vadd.f32 %v342_v23, %v80_v13  ;;  %v226_v28 = vadd.f32 %v225_v24, %v80_v13  ;;  %v344_v29 = vpop.f32.mrb[15].mxu1  ;;  %1346 = vpow2.f32 %v1596_v14 }
  0xf7   :  { %v1634_v32 = vpop.eup %1326  ;;  %v85_v33 = vpop.permute.xlu0 %84  ;;  %v1637_v34 = vmul.f32 -1.442695, %v224_v22  ;;  %v345_v37 = vadd.f32 %v344_v29, %v80_v13  ;;  %v570_v38 = vsub.f32 1.0, %v1631_v26  ;;  %1348 = vpow2.f32 %v1598_v15 }
  0xf8   :  { %v1640_v39 = vpop.eup %1328  ;;  %v1643_v41 = vmul.f32 -1.442695, %v343_v27  ;;  %v1645_v42 = vmul.f32 -1.442695, %v226_v28  ;;  %v229_v43 = vpop.f32.mrb[16].mxu0  ;;  %1350 = vpow2.f32 %v1600_v19  ;;  %v572_v1 = vsub.f32 1.0, %v1634_v32 }
  0xf9   :  { %v348_v44 = vpop.f32.mrb[16].mxu1  ;;  %v1647_v45 = vpop.eup %1330  ;;  %v1650_v14 = vmul.f32 -1.442695, %v345_v37  ;;  %v230_v46 = vadd.f32 %v229_v43, %v85_v33  ;;  %1352 = vpow2.f32 %v1602_v30  ;;  %v1655_v53 = vrot.slane %v570_v38, 6 }
  0xfa   :  { %v349_v47 = vadd.f32 %v348_v44, %v85_v33  ;;  %v231_v48 = vpop.f32.mrb[17].mxu0  ;;  %v350_v49 = vpop.f32.mrb[17].mxu1  ;;  %1354 = vpow2.f32 %v1604_v35  ;;  %v1727_v44 = vrot.slane %v569_v25, 6 }
  0xfb   :  { %v1652_v50 = vpop.eup %1332  ;;  %v232_v15 = vadd.f32 %v231_v48, %v85_v33  ;;  %v351_v52 = vadd.f32 %v350_v49, %v85_v33  ;;  %v1660_v55 = vmul.f32 -1.442695, %v230_v46  ;;  %1356 = vpow2.f32 %v1606_v36 }
  0xfc   :  { %v1657_v54 = vpop.eup %1334  ;;  %v1662_v19 = vmul.f32 -1.442695, %v349_v47  ;;  %v626_v58 = vrot.slane %v1652_v50, 2  ;;  %v1673_v62 = vsel %vm585_vm1, %v1652_v50, %v1655_v53  ;;  %1358 = vpow2.f32 %v1608_v40 }
  0xfd   :  { %v1337_v59 = vpop.eup %1336  ;;  %v1666_v60 = vmul.f32 -1.442695, %v232_v15  ;;  %v1668_v30 = vmul.f32 -1.442695, %v351_v52  ;;  %1360 = vpow2.f32 %v1610_v51  ;;  %v632_v4 = vrot.slane %v1657_v54, 2 }
  0xfe   :  { %v1675_v63 = vpop.eup %1338  ;;  %v624_v35 = vrot.slane %v1337_v59, 2  ;;  %v667_v0 = vsub.f32 1.0, %v1337_v59  ;;  %1362 = vpow2.f32 %v1612_v56  ;;  %v1698_v51 = vrot.slane %v572_v1, 6 }
  0xff   :  { %v1679_v2 = vpop.eup %1340  ;;  %v630_v36 = vrot.slane %v1675_v63, 2  ;;  %v669_v3 = vsub.f32 1.0, %v1675_v63  ;;  %1364 = vpow2.f32 %v1614_v57  ;;  %v606_v52 = vsel %vm585_vm1, %v1640_v39, %v1727_v44 }
 0x100   :  { %v1685_v6 = vpop.eup %1342  ;;  %v1687_v7 = vrot.slane %v667_v0, 2  ;;  %v668_v8 = vsub.f32 1.0, %v1679_v2  ;;  %v627_v40 = vrot.slane %v1679_v2, 2  ;;  %1366 = vpow2.f32 %v1616_v61 }
 0x101   :  { %v1692_v10 = vpop.eup %1344  ;;  %v1694_v12 = vrot.slane %v669_v3, 2  ;;  %v670_v13 = vsub.f32 1.0, %v1685_v6  ;;  %v633_v23 = vrot.slane %v1685_v6, 2  ;;  %1368 = vpow2.f32 %v1618_v9 }
 0x102   :  { %v1347_v18 = vpop.eup %1346  ;;  %v628_v22 = vsel %vm622_vm2, %v626_v58, %v627_v40  ;;  %v1704_v56 = vrot.slane %v668_v8, 2  ;;  %v1714_v57 = vsel %vm585_vm1, %v1657_v54, %v1698_v51  ;;  %1370 = vpow2.f32 %v1622_v16 }
 0x103   :  { %v1349_v24 = vpop.eup %1348  ;;  %v475_v27 = vadd.f32 1.0, %v1347_v18  ;;  %v1709_v28 = vmul.f32 %v1631_v26, %v628_v22  ;;  %v634_v33 = vsel %vm622_vm2, %v632_v4, %v633_v23  ;;  %v1720_v37 = vrot.slane %v670_v13, 2 }
 0x104   :  { %v1351_v61 = vpop.eup %1350  ;;  %v474_v29 = vadd.f32 1.0, %v1349_v24  ;;  %v1723_v43 = vmul.f32 %v1634_v32, %v634_v33  ;;  %v623_v16 = vrot.slane %v1640_v39, 2  ;;  %v2176_v48 = vrot.slane %v1692_v10, 2 }
 0x105   :  { %v1353_v38 = vpop.eup %1352  ;;  %1372 = vrcp.f32 %v475_v27  ;;  %v476_v9 = vadd.f32 1.0, %v1351_v61  ;;  %v2175_v58 = vsub.f32 1.0, %v1692_v10  ;;  %v796_v27 = vrot.slane %v1692_v10, 6 }
 0x106   :  { %v1355_v46 = vpop.eup %1354  ;;  %1374 = vrcp.f32 %v474_v29  ;;  %v477_v47 = vadd.f32 1.0, %v1353_v38  ;;  %v625_v0 = vsel %vm622_vm2, %v623_v16, %v624_v35  ;;  %v636_v1 = vsel %vm622_vm2, %v624_v35, %v2176_v48 }
 0x107   :  { %v1357_v49 = vpop.eup %1356  ;;  %1376 = vrcp.f32 %v476_v9  ;;  %v479_v15 = vadd.f32 1.0, %v1355_v46  ;;  %v1740_v8 = vmul.f32 %v1620_v11, %v625_v0  ;;  %v1742_v13 = vmul.f32 %v636_v1, %v606_v52 }
 0x108   :  { %v1359_v59 = vpop.eup %1358  ;;  %1378 = vrcp.f32 %v477_v47  ;;  %v478_v25 = vadd.f32 1.0, %v1357_v49  ;;  %v1746_v24 = vrot.slane %v2175_v58, 2  ;;  %v1751_v29 = vrot.slane %v571_v31, 6 }
 0x109   :  { %v1361_v3 = vpop.eup %1360  ;;  %1380 = vrcp.f32 %v479_v15  ;;  %v480_v4 = vadd.f32 1.0, %v1359_v59  ;;  %2199 = vst [vmem:[#allocation5_spill] sm:$0xff] %v1740_v8  ;;  %2200 = vst [vmem:[#allocation6_spill] sm:$0xff] %v1742_v13  ;;  %v629_v33 = vrot.slane %v1647_v45, 2  ;;  %v2181_v47 = vsub.f32 1.0, %v1652_v50 }
 0x10a   :  { %v1363_v18 = vpop.eup %1362  ;;  %1382 = vrcp.f32 %v478_v25  ;;  %v481_v22 = vadd.f32 1.0, %v1361_v3  ;;  %v696_v46 = vsel %vm622_vm2, %v1687_v7, %v1746_v24  ;;  %v1763_v31 = vsel %vm585_vm1, %v1647_v45, %v1751_v29 }
 0x10b   :  { %v1365_v61 = vpop.eup %1364  ;;  %1384 = vrcp.f32 %v480_v4  ;;  %v483_v35 = vadd.f32 1.0, %v1363_v18  ;;  %v1758_v15 = vmul.f32 %v696_v46, %v606_v52  ;;  %v631_v0 = vsel %vm622_vm2, %v629_v33, %v630_v36 }
 0x10c   :  { %v1367_v38 = vpop.eup %1366  ;;  %1386 = vrcp.f32 %v481_v22  ;;  %v482_v9 = vadd.f32 1.0, %v1365_v61  ;;  %v1770_v1 = vrot.slane %v2181_v47, 6  ;;  %v1776_v18 = vmul.f32 %v1626_v20, %v631_v0 }
 0x10d   :  { %v1369_v16 = vpop.eup %1368  ;;  %1388 = vrcp.f32 %v483_v35  ;;  %v484_v49 = vadd.f32 1.0, %v1367_v38 }
 0x10e   :  { %v1371_v59 = vpop.eup %1370  ;;  %1390 = vrcp.f32 %v482_v9  ;;  %v485_v25 = vadd.f32 1.0, %v1369_v16 }
 0x10f   :  { %v1772_v3 = vpop.eup %1372  ;;  %1392 = vrcp.f32 %v484_v49  ;;  %v487_v52 = vadd.f32 1.0, %v1371_v59 }
 0x110   :  { %v1778_v22 = vpop.eup %1374  ;;  %1394 = vrcp.f32 %v485_v25  ;;  %v2183_v61 = vrot.slane %v1772_v3, 2  ;;  %v2184_v35 = vsub.f32 1.0, %v1772_v3 }
 0x111   :  { %v1783_v38 = vpop.eup %1376  ;;  %1396 = vrcp.f32 %v487_v52  ;;  %v2180_v9 = vrot.slane %v1778_v22, 2  ;;  %v2177_v46 = vsub.f32 1.0, %v1778_v22  ;;  %v799_v16 = vrot.slane %v1778_v22, 6 }
 0x112   :  { %v1788_v49 = vpop.eup %1378  ;;  %1398 = vpow2.f32 %v1624_v17  ;;  %v2179_v59 = vrot.slane %v1783_v38, 2  ;;  %v2178_v25 = vsub.f32 1.0, %v1783_v38  ;;  %v805_v0 = vrot.slane %v1783_v38, 6 }
 0x113   :  { %v1794_v5 = vpop.eup %1380  ;;  %1400 = vpow2.f32 %v1628_v21  ;;  %v638_v52 = vsel %vm622_vm2, %v627_v40, %v2180_v9  ;;  %v1804_v58 = vrot.slane %v2177_v46, 2  ;;  %v797_v17 = vrot.slane %v1788_v49, 6 }
 0x114   :  { %v1807_v4 = vpop.eup %1382  ;;  %1402 = vpow2.f32 %v1637_v34  ;;  %v1811_v48 = vmul.f32 %v638_v52, %v1673_v62  ;;  %v642_v21 = vsel %vm622_vm2, %v633_v23, %v2179_v59  ;;  %v1820_v2 = vrot.slane %v2178_v25, 2 }
 0x115   :  { %v1822_v40 = vpop.eup %1384  ;;  %1404 = vpow2.f32 %v1643_v41  ;;  %v698_v34 = vsel %vm622_vm2, %v1704_v56, %v1804_v58  ;;  %v800_v52 = vrot.slane %v1807_v4, 6  ;;  %v1830_v46 = vmul.f32 %v642_v21, %v1714_v57 }
 0x116   :  { %2201 = vst [vmem:[#allocation7_spill] sm:$0xff] %v1811_v48  ;;  %v1832_v6 = vpop.eup %1386  ;;  %1406 = vpow2.f32 %v1645_v42  ;;  %v1836_v23 = vmul.f32 %v698_v34, %v1673_v62  ;;  %v702_v41 = vsel %vm622_vm2, %v1720_v37, %v1820_v2  ;;  %v806_v25 = vrot.slane %v1822_v40, 6 }
 0x117   :  { %2202 = vst [vmem:[#allocation8_spill] sm:$0xff] %v1830_v46  ;;  %v1842_v59 = vpop.eup %1388  ;;  %1408 = vpow2.f32 %v1650_v14  ;;  %v801_v21 = vsel %vm585_vm1, %v799_v16, %v800_v52  ;;  %v1847_v9 = vmul.f32 %v702_v41, %v1714_v57  ;;  %v798_v42 = vsel %vm585_vm1, %v796_v27, %v797_v17 }
 0x118   :  { %v1852_v62 = vpop.eup %1390  ;;  %1410 = vpow2.f32 %v1660_v55  ;;  %v861_v47 = vmul.f32 %v801_v21, %v1709_v28  ;;  %v807_v33 = vsel %vm585_vm1, %v805_v0, %v806_v25  ;;  %v2188_v21 = vrot.slane %v1832_v6, 6 }
 0x119   :  { %v1858_v14 = vpop.eup %1392  ;;  %1412 = vpow2.f32 %v1662_v19  ;;  %v2182_v57 = vrot.slane %v1852_v62, 6  ;;  %v863_v27 = vmul.f32 %v807_v33, %v1723_v43  ;;  %v860_v0 = vmul.f32 %v798_v42, %v1740_v8 }
 0x11a   :  { %v1864_v41 = vpop.eup %1394  ;;  %1414 = vpow2.f32 %v1666_v60  ;;  %v2187_v55 = vrot.slane %v1858_v14, 6  ;;  %v640_v60 = vsel %vm622_vm2, %v630_v36, %v2183_v61  ;;  %v1883_v33 = vrot.slane %v2184_v35, 2 }
 0x11b   :  { %v1870_v34 = vpop.eup %1396  ;;  %1416 = vpow2.f32 %v1668_v30  ;;  %v811_v19 = vsel %vm585_vm1, %v800_v52, %v2182_v57  ;;  %v809_v52 = vsel %vm585_vm1, %v797_v17, %v2188_v21  ;;  %v1893_v57 = vmul.f32 %v640_v60, %v1763_v31 }
 0x11c   :  { %2203 = vst [vmem:[#allocation9_spill] sm:$0xff] %v1870_v34  ;;  %v1399_v16 = vpop.eup %1398  ;;  %v865_v42 = vmul.f32 %v811_v19, %v1811_v48  ;;  %v815_v30 = vsel %vm585_vm1, %v806_v25, %v2187_v55  ;;  %v864_v35 = vmul.f32 %v809_v52, %v1742_v13  ;;  %v700_v19 = vsel %vm622_vm2, %v1694_v12, %v1883_v33 }
 0x11d   :  { %2204 = vst [vmem:[#allocation10_spill] sm:$0xff] %v1893_v57  ;;  %v1401_v63 = vpop.eup %1400  ;;  %v486_v36 = vadd.f32 1.0, %v1399_v16  ;;  %v867_v61 = vmul.f32 %v815_v30, %v1830_v46  ;;  %v1901_v55 = vmul.f32 %v700_v19, %v1763_v31  ;;  %v803_v17 = vrot.slane %v1794_v5, 6 }
 0x11e   :  { %v1403_v48 = vpop.eup %1402  ;;  %v488_v8 = vadd.f32 1.0, %v1401_v63  ;;  %v1247_v25 = vpack.c.bf16 %v865_v42, %v861_v47  ;;  %v1249_v30 = vpack.c.bf16 %v864_v35, %v860_v0  ;;  %v2205_v63 = vrot.slane %v1772_v3, 6 }
 0x11f   :  { %v1405_v60 = vpop.eup %1404  ;;  %1418 = vrcp.f32 %v486_v36  ;;  %v489_v16 = vadd.f32 1.0, %v1403_v48  ;;  %v1267_v21 = vpack.c.bf16 %v867_v61, %v863_v27  ;;  %v2191_v36 = vrot.slane %v1842_v59, 6 }
 0x120   :  { %v1407_v46 = vpop.eup %1406  ;;  %1420 = vrcp.f32 %v488_v8  ;;  %v491_v52 = vadd.f32 1.0, %v1405_v60  ;;  %1248 = vmatprep.subr.bf16.mxu0 %v1247_v25  ;;  %v804_v47 = vsel %vm585_vm1, %v2205_v63, %v803_v17  ;;  %v1913_v35 = vsel %vm585_vm1, %v1655_v53, %v1770_v1 }
 0x121   :  { %v1409_v31 = vpop.eup %1408  ;;  %1422 = vrcp.f32 %v489_v16  ;;  %v490_v42 = vadd.f32 1.0, %v1407_v46  ;;  %1268 = vmatprep.subr.bf16.mxu1 %v1267_v21  ;;  %1250 = vmatpush1.bf16.msra.mxu0 %v1249_v30  ;;  %v862_v48 = vmul.f32 %v804_v47, %v1776_v18  ;;  %v2206_v27 = vsub.f32 1.0, %v1652_v50 }
 0x122   :  { %v1411_v61 = vpop.eup %1410  ;;  %1424 = vrcp.f32 %v491_v52  ;;  %v492_v8 = vadd.f32 1.0, %v1409_v31  ;;  %v813_v21 = vsel %vm585_vm1, %v803_v17, %v2191_v36  ;;  %v2207_v25 = vrot.slane %v1778_v22, 2 }
 0x123   :  { %v686_v0 = vrot.slane %v2206_v27, 2  ;;  %v1413_v19 = vpop.eup %1412  ;;  %1426 = vrcp.f32 %v490_v42  ;;  %v493_v46 = vadd.f32 1.0, %v1411_v61  ;;  %v866_v53 = vmul.f32 %v813_v21, %v1893_v57 }
 0x124   :  { %v664_v60 = vmul.f32 %v2207_v25, %v1913_v35  ;;  %v1415_v16 = vpop.eup %1414  ;;  %1428 = vrcp.f32 %v492_v8  ;;  %v495_v30 = vadd.f32 1.0, %v1413_v19  ;;  %v576_v47 = vsub.f32 1.0, %v1657_v54 }
 0x125   :  { %v688_v50 = vsel %vm622_vm2, %v686_v0, %v1704_v56  ;;  %v1417_v1 = vpop.eup %1416  ;;  %1430 = vrcp.f32 %v493_v46  ;;  %v494_v52 = vadd.f32 1.0, %v1415_v16  ;;  %v1269_v31 = vpack.c.bf16 %v866_v53, %v862_v48 }
 0x126   :  { %v716_v63 = vmul.f32 %v1631_v26, %v688_v50  ;;  %1432 = vrcp.f32 %v495_v30  ;;  %v496_v17 = vadd.f32 1.0, %v1417_v1  ;;  %v573_v42 = vsub.f32 1.0, %v1640_v39 }
 0x127   :  { %1434 = vrcp.f32 %v494_v52  ;;  %v596_v8 = vrot.slane %v576_v47, 6  ;;  %v692_v27 = vrot.slane %v576_v47, 2  ;;  %1270 = vmatpush1.bf16.msra.mxu1 %v1269_v31  ;;  %v816_v0 = vrot.slane %v1864_v41, 6 }
 0x128   :  { %v741_v61 = vrot.slane %v716_v63, 4  ;;  %1436 = vrcp.f32 %v496_v17  ;;  %v590_v19 = vrot.slane %v573_v42, 6  ;;  %v683_v56 = vrot.slane %v573_v42, 2 }
 0x129   :  { %v1930_v46 = vpop.eup %1418  ;;  %v2208_v26 = vrot.slane %v1836_v23, 4  ;;  %v597_v39 = vsel %vm585_vm1, %v1698_v51, %v596_v8  ;;  %v694_v21 = vsel %vm622_vm2, %v692_v27, %v1720_v37  ;;  %v2210_v30 = vrot.slane %v1783_v38, 2 }
 0x12a   :  { %v1938_v48 = vsel %vm739_vm3, %v664_v60, %v741_v61  ;;  %v1944_v25 = vpop.eup %1420  ;;  %v818_v16 = vrot.slane %v1930_v46, 6  ;;  %v718_v50 = vmul.f32 %v1634_v32, %v694_v21  ;;  %v1952_v1 = vsel %vm585_vm1, %v1727_v44, %v590_v19 }
 0x12b   :  { %v1935_v54 = vsel %vm739_vm3, %v741_v61, %v2208_v26  ;;  %v666_v53 = vmul.f32 %v2210_v30, %v597_v39  ;;  %v1954_v60 = vpop.eup %1422  ;;  %v822_v51 = vrot.slane %v1944_v25, 6  ;;  %v2211_v37 = vrot.slane %v1692_v10, 2 }
 0x12c   :  { %2209 = vst [vmem:[#allocation11_spill] sm:$0xff] %v1935_v54  ;;  %v685_v63 = vsel %vm622_vm2, %v683_v56, %v1687_v7  ;;  %v2212_v47 = vrot.slane %v1832_v6, 6  ;;  %v1965_v32 = vpop.eup %1424  ;;  %v2213_v44 = vrot.slane %v1852_v62, 6  ;;  %v743_v42 = vrot.slane %v718_v50, 4 }
 0x12d   :  { %v663_v52 = vmul.f32 %v2211_v37, %v1952_v1  ;;  %v715_v61 = vmul.f32 %v1620_v11, %v685_v63  ;;  %v2194_v8 = vrot.slane %v1954_v60, 6  ;;  %v1972_v27 = vpop.eup %1426  ;;  %v2215_v7 = vrot.slane %v1858_v14, 6 }
 0x12e   :  { %v817_v17 = vsel %vm585_vm1, %v2212_v47, %v816_v0  ;;  %v819_v31 = vsel %vm585_vm1, %v2213_v44, %v818_v16  ;;  %2214 = vst [vmem:[#allocation12_spill] sm:$0xff] %v1972_v27  ;;  %v575_v26 = vsub.f32 1.0, %v1647_v45  ;;  %v820_v21 = vrot.slane %v1870_v34, 6  ;;  %v1980_v30 = vpop.eup %1428 }
 0x12f   :  { %v869_v19 = vmul.f32 %v819_v31, %v1938_v48  ;;  %v823_v56 = vsel %vm585_vm1, %v2215_v7, %v822_v51  ;;  %2216 = vst [vmem:[#allocation13_spill] sm:$0xff] %v1980_v30  ;;  %v826_v50 = vrot.slane %v1972_v27, 6  ;;  %v2217_v11 = vrot.slane %v1847_v9, 4  ;;  %v1991_v44 = vpop.eup %1430 }
 0x130   :  { %v1989_v63 = vsel %vm739_vm3, %v666_v53, %v743_v42  ;;  %v740_v47 = vrot.slane %v715_v61, 4  ;;  %v830_v31 = vrot.slane %v1980_v30, 6  ;;  %v825_v7 = vsel %vm585_vm1, %v816_v0, %v2194_v8  ;;  %v1998_v36 = vpop.eup %1432 }
 0x131   :  { %v1986_v37 = vsel %vm739_vm3, %v743_v42, %v2217_v11  ;;  %v871_v45 = vmul.f32 %v823_v56, %v1989_v63  ;;  %v594_v13 = vrot.slane %v575_v26, 6  ;;  %v827_v11 = vsel %vm585_vm1, %v818_v16, %v826_v50  ;;  %v2009_v30 = vpop.eup %1434 }
 0x132   :  { %v2218_v57 = vrot.slane %v1758_v15, 4  ;;  %v2007_v42 = vsel %vm739_vm3, %v663_v52, %v740_v47  ;;  %v689_v61 = vrot.slane %v575_v26, 2  ;;  %v873_v56 = vmul.f32 %v827_v11, %v1935_v54  ;;  %v2015_v16 = vpop.eup %1436 }
 0x133   :  { %v831_v0 = vsel %vm585_vm1, %v822_v51, %v830_v31  ;;  %v868_v8 = vmul.f32 %v817_v17, %v2007_v42  ;;  %v2220_v26 = vrot.slane %v1842_v59, 6  ;;  %v2221_v17 = vrot.slane %v1772_v3, 2 }
 0x134   :  { %v2004_v53 = vsel %vm739_vm3, %v740_v47, %v2218_v57  ;;  %v875_v34 = vmul.f32 %v831_v0, %v1986_v37  ;;  %v595_v57 = vsel %vm585_vm1, %v1751_v29, %v594_v13  ;;  %v691_v52 = vsel %vm622_vm2, %v689_v61, %v1694_v12 }
 0x135   :  { %2219 = vst [vmem:[#allocation14_spill] sm:$0xff] %v2004_v53  ;;  %v872_v27 = vmul.f32 %v825_v7, %v2004_v53  ;;  %v821_v47 = vsel %vm585_vm1, %v2220_v26, %v820_v21  ;;  %v1251_v11 = vpack.c.bf16 %v873_v56, %v869_v19  ;;  %v665_v54 = vmul.f32 %v2221_v17, %v595_v57 }
 0x136   :  { %v717_v7 = vmul.f32 %v1626_v20, %v691_v52  ;;  %v1271_v53 = vpack.c.bf16 %v875_v34, %v871_v45  ;;  %v828_v0 = vrot.slane %v1965_v32, 6  ;;  %v724_v13 = vmul.f32 %v1804_v58, %v1913_v35 }
 0x137   :  { %v1253_v51 = vpack.c.bf16 %v872_v27, %v868_v8  ;;  %v834_v29 = vrot.slane %v2009_v30, 6  ;;  %1252 = vmatprep.subr.bf16.mxu0 %v1251_v11  ;;  %v881_v61 = vsub.f32 1.0, %v1807_v4  ;;  %v2222_v19 = vsub.f32 1.0, %v1778_v22 }
 0x138   :  { %v742_v12 = vrot.slane %v717_v7, 4  ;;  %v726_v27 = vmul.f32 %v1820_v2, %v597_v39  ;;  %1272 = vmatprep.subr.bf16.mxu1 %v1271_v53  ;;  %v829_v20 = vsel %vm585_vm1, %v820_v21, %v828_v0  ;;  %v754_v34 = vrot.slane %v724_v13, 4 }
 0x139   :  { %v923_v8 = vrot.slane %v2222_v19, 6  ;;  %1254 = vmatpush1.bf16.msra.mxu0 %v1253_v51  ;;  %v835_v45 = vsel %vm585_vm1, %v826_v50, %v834_v29  ;;  %v838_v58 = vrot.slane %v2015_v16, 6  ;;  %v2223_v35 = vrot.slane %v1901_v55, 4 }
 0x13a   :  { %v2045_v4 = vsel %vm739_vm3, %v665_v54, %v742_v12  ;;  %v924_v22 = vrot.slane %v881_v61, 6  ;;  %v758_v52 = vrot.slane %v726_v27, 4  ;;  %v2224_v21 = vrot.slane %v1836_v23, 4 }
 0x13b   :  { %v2042_v56 = vsel %vm739_vm3, %v742_v12, %v2223_v35  ;;  %v870_v2 = vmul.f32 %v821_v47, %v2045_v4  ;;  %v839_v53 = vsel %vm585_vm1, %v830_v31, %v838_v58  ;;  %v2225_v54 = vrot.slane %v1847_v9, 4 }
 0x13c   :  { %v874_v39 = vmul.f32 %v829_v20, %v2042_v56  ;;  %v2052_v50 = vsel %vm739_vm3, %v2224_v21, %v754_v34  ;;  %v925_v11 = vsel %vm585_vm1, %v923_v8, %v924_v22  ;;  %v883_v47 = vsub.f32 1.0, %v1822_v40 }
 0x13d   :  { %v877_v26 = vmul.f32 %v835_v45, %v2052_v50  ;;  %v2060_v51 = vsel %vm739_vm3, %v2225_v54, %v758_v52  ;;  %v985_v7 = vmul.f32 %v925_v11, %v1709_v28  ;;  %v2226_v13 = vsub.f32 1.0, %v1783_v38 }
 0x13e   :  { %v1273_v17 = vpack.c.bf16 %v874_v39, %v870_v2  ;;  %v879_v23 = vmul.f32 %v839_v53, %v2060_v51  ;;  %v930_v31 = vrot.slane %v883_v47, 6  ;;  %v723_v12 = vmul.f32 %v1746_v24, %v1952_v1  ;;  %v2231_v53 = vld [vmem:[#allocation5_spill] sm:$0xff] }
 0x13f   :  { %v929_v29 = vrot.slane %v2226_v13, 6  ;;  %v832_v61 = vrot.slane %v1991_v44, 6  ;;  %v880_v9 = vsub.f32 1.0, %v1788_v49  ;;  %v1255_v19 = vpack.c.bf16 %v985_v7, %v877_v26 }
 0x140   :  { %1274 = vmatpush1.bf16.msra.mxu1 %v1273_v17  ;;  %v2227_v40 = vsub.f32 1.0, %v1692_v10  ;;  %v725_v28 = vmul.f32 %v1883_v33, %v595_v57  ;;  %v836_v27 = vrot.slane %v1998_v36, 6  ;;  %v752_v20 = vrot.slane %v723_v12, 4 }
 0x141   :  { %v931_v38 = vsel %vm585_vm1, %v929_v29, %v930_v31  ;;  %v2228_v34 = vrot.slane %v1954_v60, 6  ;;  %v921_v1 = vrot.slane %v880_v9, 6  ;;  %1256 = vmatprep.subr.bf16.mxu0 %v1255_v19  ;;  %v882_v10 = vsub.f32 1.0, %v1794_v5 }
 0x142   :  { %v920_v8 = vrot.slane %v2227_v40, 6  ;;  %v987_v49 = vmul.f32 %v931_v38, %v1723_v43  ;;  %v756_v45 = vrot.slane %v725_v28, 4  ;;  %v837_v58 = vsel %vm585_vm1, %v828_v0, %v836_v27  ;;  %v2234_v27 = vld [vmem:[#allocation8_spill] sm:$0xff] }
 0x143   :  { %v833_v24 = vsel %vm585_vm1, %v2228_v34, %v832_v61  ;;  %v2229_v33 = vrot.slane %v1758_v15, 4  ;;  %v2230_v52 = vsub.f32 1.0, %v1772_v3  ;;  %v885_v39 = vsub.f32 1.0, %v1852_v62 }
 0x144   :  { %v922_v35 = vsel %vm585_vm1, %v920_v8, %v921_v1  ;;  %v1275_v21 = vpack.c.bf16 %v987_v49, %v879_v23  ;;  %v2232_v0 = vrot.slane %v1901_v55, 4  ;;  %v927_v11 = vrot.slane %v882_v10, 6  ;;  %v2235_v49 = vld [vmem:[#allocation6_spill] sm:$0xff] }
 0x145   :  { %v2085_v57 = vsel %vm739_vm3, %v2229_v33, %v752_v20  ;;  %v926_v2 = vrot.slane %v2230_v52, 6  ;;  %v984_v26 = vmul.f32 %v922_v35, %v2231_v53  ;;  %v889_v54 = vsub.f32 1.0, %v1930_v46  ;;  %v2233_v46 = vld [vmem:[#allocation7_spill] sm:$0xff]  ;;  %v2237_v33 = vld [vmem:[#allocation12_spill] sm:$0xff] }
 0x146   :  { %v876_v43 = vmul.f32 %v833_v24, %v2085_v57  ;;  %v2096_v5 = vsel %vm739_vm3, %v2232_v0, %v756_v45  ;;  %v934_v47 = vrot.slane %v885_v39, 6  ;;  %1276 = vmatprep.subr.bf16.mxu1 %v1275_v21  ;;  %v887_v62 = vsub.f32 1.0, %v1858_v14 }
 0x147   :  { %v878_v15 = vmul.f32 %v837_v58, %v2096_v5  ;;  %v891_v17 = vsub.f32 1.0, %v1944_v25  ;;  %v884_v7 = vsub.f32 1.0, %v1832_v6  ;;  %v928_v23 = vsel %vm585_vm1, %v926_v2, %v927_v11  ;;  %v2236_v58 = vld [vmem:[#allocation9_spill] sm:$0xff] }
 0x148   :  { %v1257_v3 = vpack.c.bf16 %v984_v26, %v876_v43  ;;  %v935_v55 = vsel %vm585_vm1, %v924_v22, %v934_v47  ;;  %v942_v13 = vrot.slane %v889_v54, 6  ;;  %v888_v29 = vsub.f32 1.0, %v1864_v41 }
 0x149   :  { %v986_v12 = vmul.f32 %v928_v23, %v1776_v18  ;;  %v989_v61 = vmul.f32 %v935_v55, %v2233_v46  ;;  %v938_v9 = vrot.slane %v887_v62, 6  ;;  %v946_v19 = vrot.slane %v891_v17, 6 }
 0x14a   :  { %1258 = vmatpush1.bf16.msra.mxu0 %v1257_v3  ;;  %v943_v14 = vsel %vm585_vm1, %v934_v47, %v942_v13  ;;  %v932_v40 = vrot.slane %v884_v7, 6  ;;  %v940_v25 = vrot.slane %v888_v29, 6  ;;  %v886_v6 = vsub.f32 1.0, %v1842_v59 }
 0x14b   :  { %v1277_v8 = vpack.c.bf16 %v986_v12, %v878_v15  ;;  %v993_v28 = vmul.f32 %v943_v14, %v1938_v48  ;;  %v939_v22 = vsel %vm585_vm1, %v930_v31, %v938_v9  ;;  %v947_v41 = vsel %vm585_vm1, %v938_v9, %v946_v19  ;;  %v2239_v15 = vld [vmem:[#allocation10_spill] sm:$0xff] }
 0x14c   :  { %v991_v38 = vmul.f32 %v939_v22, %v2234_v27  ;;  %v995_v18 = vmul.f32 %v947_v41, %v1989_v63  ;;  %v933_v20 = vsel %vm585_vm1, %v921_v1, %v932_v40  ;;  %v941_v34 = vsel %vm585_vm1, %v932_v40, %v940_v25  ;;  %v2238_v1 = vld [vmem:[#allocation13_spill] sm:$0xff]  ;;  %v2241_v40 = vld [vmem:[#allocation14_spill] sm:$0xff] }
 0x14d   :  { %1278 = vmatpush1.bf16.msra.mxu1 %v1277_v8  ;;  %v1259_v24 = vpack.c.bf16 %v993_v28, %v989_v61  ;;  %v988_v45 = vmul.f32 %v933_v20, %v2235_v49  ;;  %v992_v59 = vmul.f32 %v941_v34, %v2007_v42  ;;  %v890_v48 = vsub.f32 1.0, %v2236_v58  ;;  %v40_v27 = vld [vmem:[%s2171_s3] sm:$0xff] }
 0x14e   :  { %v1279_v10 = vpack.c.bf16 %v995_v18, %v991_v38  ;;  %v936_v31 = vrot.slane %v886_v6, 6  ;;  %v893_v35 = vsub.f32 1.0, %v2237_v33  ;;  %v897_v52 = vsub.f32 1.0, %v2009_v30 }
 0x14f   :  { %1260 = vmatprep.subr.bf16.mxu0 %v1259_v24  ;;  %v1261_v63 = vpack.c.bf16 %v992_v59, %v988_v45  ;;  %v944_v2 = vrot.slane %v890_v48, 6  ;;  %v895_v39 = vsub.f32 1.0, %v2238_v1  ;;  %v899_v21 = vsub.f32 1.0, %v2015_v16 }
 0x150   :  { %1280 = vmatprep.subr.bf16.mxu1 %v1279_v10  ;;  %v937_v43 = vsel %vm585_vm1, %v927_v11, %v936_v31  ;;  %v950_v53 = vrot.slane %v893_v35, 6  ;;  %v958_v42 = vrot.slane %v897_v52, 6  ;;  %v892_v26 = vsub.f32 1.0, %v1954_v60  ;;  %v2240_v11 = vld [vmem:[#allocation11_spill] sm:$0xff] }
 0x151   :  { %1262 = vmatpush1.bf16.msra.mxu0 %v1261_v63  ;;  %v945_v0 = vsel %vm585_vm1, %v936_v31, %v944_v2  ;;  %v990_v54 = vmul.f32 %v937_v43, %v2239_v15  ;;  %v954_v30 = vrot.slane %v895_v39, 6  ;;  %v962_v47 = vrot.slane %v899_v21, 6 }
 0x152   :  { %v994_v3 = vmul.f32 %v945_v0, %v2045_v4  ;;  %v951_v62 = vsel %vm585_vm1, %v942_v13, %v950_v53  ;;  %v959_v16 = vsel %vm585_vm1, %v950_v53, %v958_v42  ;;  %v896_v17 = vsub.f32 1.0, %v1991_v44 }
 0x153   :  { %v997_v7 = vmul.f32 %v951_v62, %v2240_v11  ;;  %v1001_v23 = vmul.f32 %v959_v16, %v2052_v50  ;;  %v955_v60 = vsel %vm585_vm1, %v946_v19, %v954_v30  ;;  %v963_v55 = vsel %vm585_vm1, %v954_v30, %v962_v47 }
 0x154   :  { %v1281_v29 = vpack.c.bf16 %v994_v3, %v990_v54  ;;  %v999_v12 = vmul.f32 %v955_v60, %v1986_v37  ;;  %v1003_v46 = vmul.f32 %v963_v55, %v2060_v51  ;;  %v948_v4 = vrot.slane %v892_v26, 6 }
 0x155   :  { %v1263_v61 = vpack.c.bf16 %v1001_v23, %v997_v7  ;;  %v956_v13 = vrot.slane %v896_v17, 6  ;;  %v894_v9 = vsub.f32 1.0, %v1965_v32  ;;  %v898_v44 = vsub.f32 1.0, %v1998_v36 }
 0x156   :  { %1282 = vmatpush1.bf16.msra.mxu1 %v1281_v29  ;;  %v1283_v14 = vpack.c.bf16 %v1003_v46, %v999_v12  ;;  %v949_v50 = vsel %vm585_vm1, %v940_v25, %v948_v4  ;;  %v2242_v38 = vmov 0.0  }
 0x157   :  { %1264 = vmatprep.subr.bf16.mxu0 %v1263_v61  ;;  %v957_v19 = vsel %vm585_vm1, %v948_v4, %v956_v13  ;;  %v996_v6 = vmul.f32 %v949_v50, %v2241_v40  ;;  %v952_v8 = vrot.slane %v894_v9, 6  ;;  %v960_v37 = vrot.slane %v898_v44, 6 }
 0x158   :  { %1284 = vmatprep.subr.bf16.mxu1 %v1283_v14  ;;  %v1000_v51 = vmul.f32 %v957_v19, %v2085_v57  ;;  %v41_v57 = vld [vmem:[%s2171_s3 + $0x8] sm:$0x3]  ;;  %s1438_s3 = scalar_lea.vmem %s1179_s8, 1024 }
 0x159   :  { %v953_v28 = vsel %vm585_vm1, %v944_v2, %v952_v8  ;;  %v961_v32 = vsel %vm585_vm1, %v952_v8, %v960_v37  ;;  %p1439_p0 = scmp.ne.s32.totalorder %s1179_s8, %s1438_s3  ;;  %p1444_p2 = scmp.lt.s32.totalorder %s1438_s3, %s1438_s3 }
 0x15a   :  { %v1265_v22 = vpack.c.bf16 %v1000_v51, %v996_v6  ;;  %v998_v36 = vmul.f32 %v953_v28, %v2042_v56  ;;  %v1002_v41 = vmul.f32 %v961_v32, %v2096_v5 }
 0x15b   :  { %p1445_p3 = por %p1444_p2, %p1443_p1 }
 0x15c   :  { %1266 = vmatpush1.bf16.msra.mxu0 %v1265_v22  ;;  %v1285_v25 = vpack.c.bf16 %v1002_v41, %v998_v36 }
 0x15d   :  { %p1446_p4 = pnand %p1445_p3, %p1439_p0 }
 0x15e   :  { %1286 = vmatpush1.bf16.msra.mxu1 %v1285_v25 }
 0x15f   :  { %1243 = vmatmul.mubr.msk.f32.vlgmr.msra.gmra.mrb[18].mxu0 %vm1004_vm4, %v40_v27 }
 0x160   :  { %1081 = vmatprep.mubr.f32.mxu0 %v2242_v38 }
 0x161   :  { %1245 = vmatmul.mubr.msk.f32.vlgmr.msra.gmra.mrb[18].mxu1 %vm1004_vm4, %v40_v27 }
 0x162   :  { %1158 = vmatprep.mubr.f32.mxu1 %v2242_v38 }
 0x163   :  { %1244 = vmatmul.mubr.msk.f32.gmra.mrb[20].mxu0 %vm1004_vm4, %v41_v57 }
 0x165   :  { %1246 = vmatmul.mubr.msk.f32.gmra.mrb[20].mxu1 %vm1004_vm4, %v41_v57 }
 0x232   :  { %v1077_v56 = vpop.f32.mrb[18].mxu0 }
 0x233   :  { %1165 = vst [vmem:[#allocation2] sm:$0xff] %v1077_v56  ;;  %v1079_v5 = vpop.f32.mrb[19].mxu0 }
 0x234   :  { %v1154_v18 = vpop.f32.mrb[18].mxu1  ;;  %1166 = vst [vmem:[#allocation2 + $0x8] sm:$0xff] %v1079_v5 }
 0x235   :  { %1167 = vst [vmem:[#allocation2 + $0x10] sm:$0xff] %v1154_v18  ;;  %v1156_v20 = vpop.f32.mrb[19].mxu1 }
 0x236   :  { %1168 = vst [vmem:[#allocation2 + $0x18] sm:$0xff] %v1156_v20  ;;  %v1083_v34 = vpop.f32.mrb[20].mxu0 }
 0x237   :  { %1169 = vst [vmem:[#allocation2 + $0x20] sm:$0x3] %v1083_v34  ;;  %v1085_v24 = vpop.f32.mrb[21].mxu0 }
 0x238   :  { %v1160_v49 = vpop.f32.mrb[20].mxu1  ;;  %1170 = vst [vmem:[#allocation2 + $0x28] sm:$0x3] %v1085_v24 }
 0x239   :  { %1171 = vst [vmem:[#allocation2 + $0x30] sm:$0x3] %v1160_v49  ;;  %v1162_v45 = vpop.f32.mrb[21].mxu1 }
 0x23a   :  { %1172 = vst [vmem:[#allocation2 + $0x38] sm:$0x3] %v1162_v45 }
 0x23b   :  { %1449 = shalt.err (!%p1446_p4)
}
 0x23c   :  { %s1450_s11 = scalar_lea.hbm %s2172_s4, 1024 }
 0x23d   :  { %p1451_p5 = scmp.ne.s32.totalorder %s2172_s4, %s1450_s11  ;;  %p1454_p6 = scmp.lt.u32.totalorder %s1450_s11, %s2172_s4 }
 0x23f   :  { %p1456_p7 = pnand %p1454_p6, %p1451_p5 }
 0x241   :  { %1459 = shalt.err (!%p1456_p7)
}
 0x242   :  { %s1465_s16 = smov 512   ;;  %s1466_s17 = smov 32  }
 0x243   :  { %1184 = dma.vmem_to_hbm [thread:$0]  %s1179_s8, 1024, %s2172_s4, [#allocation3], %s1465_s16, %s1465_s16, %s1466_s17  }
 0x244   :  { %1460 = dma.done.wait [#allocation3], 1024  }
 0x245   :  { %1461 = vsyncadd [#allocation3], 4294966272 }
 0x246   :  { %1188 = vsyncpa [#allocation3], 1 }

</bundles_post_ra>
